<compile_context>
chip_gen: v6e
topology: v6e:2x2x1
jax: 0.10.0
libtpu: 0.0.40
codegen_flags: <defaults>
</compile_context>

<pallas_src>
import jax
import jax.numpy as jnp
from jax.experimental import pallas as pl
from jax.experimental.pallas import tpu as pltpu


def _round_up(n, m):
    return ((n + m - 1) // m) * m


def _dec_kernel(alpha):
    """Kernel closure with the Student-t `alpha` baked in."""
    alpha = float(alpha)
    power = -(alpha + 1.0) / 2.0

    def kernel(x_ref, w1_ref, b1_ref, w2_ref, b2_ref, ctm_ref, csq_ref, q_ref):
        # ---- encoder: 2-layer MLP. Matmuls run in the *input* dtype on the
        # MXU (bf16 stays bf16 -> full MXU rate); accumulation is f32.
        h = jnp.dot(x_ref[...], w1_ref[...],
                    preferred_element_type=jnp.float32)
        h = jnp.maximum(h + b1_ref[...].astype(jnp.float32), 0.0)      # ReLU
        z = jnp.dot(h.astype(w2_ref.dtype), w2_ref[...],
                    preferred_element_type=jnp.float32)
        z = z + b2_ref[...].astype(jnp.float32)                        # (tb, Z)

        # ---- cluster: ||z_i - c_j||^2 = ||z||^2 + ||c||^2 - 2 z.c
        # ctm = -2 * centers^T (pre-scaled in the wrapper), csq = ||c||^2 with
        # padded lanes set to 1e30 so their `nom` underflows to ~0 (no mask op).
        cross = jnp.dot(z.astype(ctm_ref.dtype), ctm_ref[...],
                        preferred_element_type=jnp.float32)            # (tb, Kp)
        z_sq = jnp.sum(z * z, axis=1, keepdims=True)                   # (tb, 1)
        d2 = jnp.maximum(z_sq + csq_ref[...] + cross, 0.0)             # guard

        # Student-t soft assignment: nom = (1 + d^2/alpha)^(-(alpha+1)/2)
        if alpha == 1.0:
            # power == -1 exactly -> one approximate EUP reciprocal / element
            # (~2^-12 relative error; fine for downstream KL training).
            nom = pl.reciprocal(1.0 + d2, approx=True)
        else:
            nom = jnp.exp(power * jnp.log1p(d2 * (1.0 / alpha)))

        # Exact reciprocal for the (tb, 1) denominator: row sums == 1 to f32.
        denom = jnp.sum(nom, axis=1, keepdims=True)
        inv = pl.reciprocal(denom, approx=False)
        q_ref[...] = (nom * inv).astype(q_ref.dtype)

    return kernel


def dec_forward(x, w1, b1, w2, b2, centers, alpha=1.0, *,
                tile_b=None, out_dtype=jnp.float32, mxu_dtype=None):
    """Fused DEC forward: q = cluster(encoder(x)). Returns (B, K) in out_dtype.

    out_dtype=jnp.bfloat16 halves output HBM bytes (precision fine post-norm);
    mxu_dtype=jnp.bfloat16 casts x/W1/W2/centers for the MXU (v6e/v7x win),
    accumulation stays f32 in-kernel. Defaults preserve f32 torch semantics.
    """
    B, D_in = x.shape
    H = w1.shape[1]
    Z = w2.shape[1]
    K = centers.shape[0]

    # ---- lane-dense cluster axis: pad K to a multiple of 128. Fold the
    # padding mask into the constants: padded ||c||^2 = 1e30 -> nom ~ 0.
    # Pre-scale centers^T by -2 so the kernel has no 2*cross multiply.
    K_pad = _round_up(max(K, 1), 128)
    c32 = centers.astype(jnp.float32)
    ctm = jnp.zeros((Z, K_pad), dtype=centers.dtype).at[:, :K].set(
        (-2.0 * c32.T).astype(centers.dtype))
    c_sq = jnp.full((1, K_pad), 1e30, dtype=jnp.float32).at[:, :K].set(
        jnp.sum(c32 * c32, axis=1)[None, :])

    if mxu_dtype is not None:
        x = x.astype(mxu_dtype)
        w1 = w1.astype(mxu_dtype)
        w2 = w2.astype(mxu_dtype)
        ctm = ctm.astype(mxu_dtype)

    # ---- batch tiling: several grid steps (megacore + pipelining), no padded
    # copy of x — Pallas handles the ragged last block; out_shape is (B, K_pad).
    if tile_b is None:
        tile_b = min(512, max(128, _round_up(B, 8) // 8))
        if H >= 1024:  # wide hidden: keep the f32 h intermediate small
            tile_b = min(tile_b, 256)
    tile_b = _round_up(max(8, min(int(tile_b), _round_up(B, 8))), 8)
    grid = (pl.cdiv(B, tile_b),)

    # Rough VMEM budget: double-buffered streamed x / q tiles + single-buffered
    # resident params + f32 intermediates; clamp within every generation's VMEM.
    isz = jnp.dtype(x.dtype).itemsize
    wsz = jnp.dtype(w1.dtype).itemsize
    osz = jnp.dtype(out_dtype).itemsize
    streamed = 2 * tile_b * (D_in * isz + K_pad * osz)
    resident = ((D_in * H + H * Z) * wsz
                + (H + Z) * jnp.dtype(b1.dtype).itemsize
                + Z * K_pad * jnp.dtype(ctm.dtype).itemsize + K_pad * 4)
    interm = tile_b * (H + Z + 2 * K_pad) * 4
    vmem_limit = int(min(max(2 * (streamed + resident + interm), 32 * 2**20),
                         48 * 2**20))

    def build(single_buffer_constants):
        kw = (dict(pipeline_mode=pl.Buffered(1))
              if single_buffer_constants else {})
        in_specs = [
            pl.BlockSpec((tile_b, D_in), lambda i: (i, 0)),       # x  (streamed)
            pl.BlockSpec((D_in, H), lambda i: (0, 0), **kw),      # W1 (resident)
            pl.BlockSpec((1, H), lambda i: (0, 0), **kw),         # b1
            pl.BlockSpec((H, Z), lambda i: (0, 0), **kw),         # W2
            pl.BlockSpec((1, Z), lambda i: (0, 0), **kw),         # b2
            pl.BlockSpec((Z, K_pad), lambda i: (0, 0), **kw),     # -2*centers^T
            pl.BlockSpec((1, K_pad), lambda i: (0, 0), **kw),     # ||c||^2+mask
        ]
        return pl.pallas_call(
            _dec_kernel(alpha),
            out_shape=jax.ShapeDtypeStruct((B, K_pad), out_dtype),
            grid=grid,
            in_specs=in_specs,
            out_specs=pl.BlockSpec((tile_b, K_pad), lambda i: (i, 0)),
            compiler_params=pltpu.CompilerParams(
                dimension_semantics=("parallel",),   # megacore on v7x
                vmem_limit_bytes=vmem_limit),
        )

    try:
        q_pad = build(True)(x, w1, b1, w2, b2, ctm, c_sq)
    except Exception:
        # This jax build rejected pl.Buffered(1) single-buffering; fall back to
        # default (double-buffered) resident specs.
        q_pad = build(False)(x, w1, b1, w2, b2, ctm, c_sq)

    # Consumers that can accept the lane-padded (B, K_pad) array directly can
    # skip this slice pass entirely.
    return q_pad[:, :K]


def dec_forward_ref(x, w1, b1, w2, b2, centers, alpha=1.0):
    """Pure-JAX reference mirroring the PyTorch module."""
    h = jnp.maximum(x @ w1 + b1, 0.0)
    z = h @ w2 + b2
    diff = z[:, None, :] - centers[None, :, :]
    square_dist = jnp.sum(diff * diff, axis=2)
    nom = jnp.power(1.0 + square_dist / alpha, -(alpha + 1.0) / 2.0)
    denom = jnp.sum(nom, axis=1, keepdims=True)
    return nom / denom


if __name__ == "__main__":
    # Small, forward-consistent shapes.
    B, D_in, H, Z, K = 8, 32, 32, 16, 10
    alpha = 1.0

    key = jax.random.PRNGKey(0)
    kx, k1, k2, k3, k4, kc = jax.random.split(key, 6)

    x = jax.random.normal(kx, (B, D_in), dtype=jnp.float32)
    # Synthetic MLP encoder parameters (D_in -> H -> Z).
    w1 = jax.random.normal(k1, (D_in, H), dtype=jnp.float32) * 0.1
    b1 = jax.random.normal(k2, (1, H), dtype=jnp.float32) * 0.01
    w2 = jax.random.normal(k3, (H, Z), dtype=jnp.float32) * 0.1
    b2 = jax.random.normal(k4, (1, Z), dtype=jnp.float32) * 0.01
    # Cluster centers (K, Z), as in Cluster(center, alpha).
    centers = jax.random.normal(kc, (K, Z), dtype=jnp.float32)

    # Default (semantics-preserving) path: f32 output, matmuls in caller dtype.
    q = jax.block_until_ready(dec_forward(x, w1, b1, w2, b2, centers, alpha=alpha))
    q_ref = dec_forward_ref(x, w1, b1, w2, b2, centers, alpha=alpha)
    assert q.shape == (B, K)
    assert jnp.allclose(jnp.sum(q, axis=1), 1.0, atol=1e-3)
    assert jnp.allclose(q, q_ref, atol=5e-3, rtol=5e-3)

    # Performance configuration: bf16 MXU inputs + bf16 output (halves HBM
    # output bytes); compared with looser tolerances.
    q_bf = jax.block_until_ready(
        dec_forward(x, w1, b1, w2, b2, centers, alpha=alpha,
                    out_dtype=jnp.bfloat16, mxu_dtype=jnp.bfloat16))
    assert q_bf.shape == (B, K)
    assert jnp.allclose(q_bf.astype(jnp.float32), q_ref, atol=2e-2, rtol=2e-2)

    print("KERNEL_OK")
</pallas_src>

<mosaic_0001>
module attributes {stable_mosaic.version = 11 : i64} {
  func.func @kernel(%arg0: i32, %arg1: memref<8x32xf32, #tpu.memory_space<vmem>>, %arg2: memref<32x32xf32, #tpu.memory_space<vmem>>, %arg3: memref<1x32xf32, #tpu.memory_space<vmem>>, %arg4: memref<32x16xf32, #tpu.memory_space<vmem>>, %arg5: memref<1x16xf32, #tpu.memory_space<vmem>>, %arg6: memref<16x128xf32, #tpu.memory_space<vmem>>, %arg7: memref<1x128xf32, #tpu.memory_space<vmem>>, %arg8: memref<8x128xf32, #tpu.memory_space<vmem>>) attributes {dimension_semantics = [#tpu.dimension_semantics<parallel>], iteration_bounds = array<i64: 1>, scalar_prefetch = 0 : i64, scratch_operands = 0 : i64, tpu.core_type = #tpu.core_type<tc>, window_params = [{transform_indices = @transform_0, window_bounds = array<i64: 8, 32>}, {pipeline_mode = #tpu.pipeline_mode<synchronous>, transform_indices = @transform_1, window_bounds = array<i64: 32, 32>}, {pipeline_mode = #tpu.pipeline_mode<synchronous>, transform_indices = @transform_2, window_bounds = array<i64: 1, 32>}, {pipeline_mode = #tpu.pipeline_mode<synchronous>, transform_indices = @transform_3, window_bounds = array<i64: 32, 16>}, {pipeline_mode = #tpu.pipeline_mode<synchronous>, transform_indices = @transform_4, window_bounds = array<i64: 1, 16>}, {pipeline_mode = #tpu.pipeline_mode<synchronous>, transform_indices = @transform_5, window_bounds = array<i64: 16, 128>}, {pipeline_mode = #tpu.pipeline_mode<synchronous>, transform_indices = @transform_6, window_bounds = array<i64: 1, 128>}, {transform_indices = @transform_7, window_bounds = array<i64: 8, 128>}]} {
    %c0 = arith.constant 0 : index
    %c0_0 = arith.constant 0 : index
    %0 = vector.load %arg1[%c0, %c0_0] : memref<8x32xf32, #tpu.memory_space<vmem>>, vector<8x32xf32>
    %c0_1 = arith.constant 0 : index
    %c0_2 = arith.constant 0 : index
    %1 = vector.load %arg2[%c0_1, %c0_2] : memref<32x32xf32, #tpu.memory_space<vmem>>, vector<32x32xf32>
    %cst = arith.constant dense<0.000000e+00> : vector<8x32xf32>
    %2 = tpu.matmul %0, %1, %cst {dimension_numbers = #tpu.dot_dimension_numbers<[1], [0], [0], [1], [0, 0, 1, 1], [], []>} : vector<8x32xf32>, vector<32x32xf32>, vector<8x32xf32> -> vector<8x32xf32>
    %c0_3 = arith.constant 0 : index
    %c0_4 = arith.constant 0 : index
    %3 = vector.load %arg3[%c0_3, %c0_4] : memref<1x32xf32, #tpu.memory_space<vmem>>, vector<1x32xf32>
    %4 = vector.broadcast %3 : vector<1x32xf32> to vector<8x32xf32>
    %5 = arith.addf %2, %4 : vector<8x32xf32>
    %cst_5 = arith.constant 0.000000e+00 : f32
    %6 = vector.broadcast %cst_5 : f32 to vector<8x32xf32>
    %7 = arith.maximumf %5, %6 : vector<8x32xf32>
    %c0_6 = arith.constant 0 : index
    %c0_7 = arith.constant 0 : index
    %8 = vector.load %arg4[%c0_6, %c0_7] : memref<32x16xf32, #tpu.memory_space<vmem>>, vector<32x16xf32>
    %cst_8 = arith.constant dense<0.000000e+00> : vector<8x16xf32>
    %9 = tpu.matmul %7, %8, %cst_8 {dimension_numbers = #tpu.dot_dimension_numbers<[1], [0], [0], [1], [0, 0, 1, 1], [], []>} : vector<8x32xf32>, vector<32x16xf32>, vector<8x16xf32> -> vector<8x16xf32>
    %c0_9 = arith.constant 0 : index
    %c0_10 = arith.constant 0 : index
    %10 = vector.load %arg5[%c0_9, %c0_10] : memref<1x16xf32, #tpu.memory_space<vmem>>, vector<1x16xf32>
    %11 = vector.broadcast %10 : vector<1x16xf32> to vector<8x16xf32>
    %12 = arith.addf %9, %11 : vector<8x16xf32>
    %c0_11 = arith.constant 0 : index
    %c0_12 = arith.constant 0 : index
    %13 = vector.load %arg6[%c0_11, %c0_12] : memref<16x128xf32, #tpu.memory_space<vmem>>, vector<16x128xf32>
    %cst_13 = arith.constant dense<0.000000e+00> : vector<8x128xf32>
    %14 = tpu.matmul %12, %13, %cst_13 {dimension_numbers = #tpu.dot_dimension_numbers<[1], [0], [0], [1], [0, 0, 1, 1], [], []>} : vector<8x16xf32>, vector<16x128xf32>, vector<8x128xf32> -> vector<8x128xf32>
    %15 = arith.mulf %12, %12 : vector<8x16xf32>
    %cst_14 = arith.constant dense<0.000000e+00> : vector<8xf32>
    %16 = vector.multi_reduction <add>, %15, %cst_14 [1] : vector<8x16xf32> to vector<8xf32>
    %17 = vector.shape_cast %16 : vector<8xf32> to vector<8x1xf32>
    %c0_15 = arith.constant 0 : index
    %c0_16 = arith.constant 0 : index
    %18 = vector.load %arg7[%c0_15, %c0_16] : memref<1x128xf32, #tpu.memory_space<vmem>>, vector<1x128xf32>
    %19 = vector.broadcast %17 : vector<8x1xf32> to vector<8x128xf32>
    %20 = vector.broadcast %18 : vector<1x128xf32> to vector<8x128xf32>
    %21 = arith.addf %19, %20 : vector<8x128xf32>
    %22 = arith.addf %21, %14 : vector<8x128xf32>
    %cst_17 = arith.constant 0.000000e+00 : f32
    %23 = vector.broadcast %cst_17 : f32 to vector<8x128xf32>
    %24 = arith.maximumf %22, %23 : vector<8x128xf32>
    %cst_18 = arith.constant 1.000000e+00 : f32
    %25 = vector.broadcast %cst_18 : f32 to vector<8x128xf32>
    %26 = arith.addf %25, %24 : vector<8x128xf32>
    %27 = tpu.reciprocal %26 {approx = true} : vector<8x128xf32> -> vector<8x128xf32>
    %cst_19 = arith.constant dense<0.000000e+00> : vector<8xf32>
    %28 = vector.multi_reduction <add>, %27, %cst_19 [1] : vector<8x128xf32> to vector<8xf32>
    %29 = vector.shape_cast %28 : vector<8xf32> to vector<8x1xf32>
    %30 = tpu.reciprocal %29 : vector<8x1xf32> -> vector<8x1xf32>
    %31 = vector.broadcast %30 : vector<8x1xf32> to vector<8x128xf32>
    %32 = arith.mulf %27, %31 : vector<8x128xf32>
    %c0_20 = arith.constant 0 : index
    %c0_21 = arith.constant 0 : index
    %33 = vector.load %arg8[%c0_20, %c0_21] : memref<8x128xf32, #tpu.memory_space<vmem>>, vector<8x128xf32>
    tpu.vector_store %arg8[%c0_20, %c0_21], %32 {strides = array<i32>} : memref<8x128xf32, #tpu.memory_space<vmem>>, vector<8x128xf32>,
    return
  }
  func.func @transform_0(%arg0: i32) -> (i32, i32) {
    %c0_i32 = arith.constant 0 : i32
    %c0_i32_0 = arith.constant 0 : i32
    return %arg0, %c0_i32 : i32, i32
  }
  func.func @transform_1(%arg0: i32) -> (i32, i32) {
    %c0_i32 = arith.constant 0 : i32
    %c0_i32_0 = arith.constant 0 : i32
    %c0_i32_1 = arith.constant 0 : i32
    return %c0_i32, %c0_i32_0 : i32, i32
  }
  func.func @transform_2(%arg0: i32) -> (i32, i32) {
    %c0_i32 = arith.constant 0 : i32
    %c0_i32_0 = arith.constant 0 : i32
    %c0_i32_1 = arith.constant 0 : i32
    return %c0_i32, %c0_i32_0 : i32, i32
  }
  func.func @transform_3(%arg0: i32) -> (i32, i32) {
    %c0_i32 = arith.constant 0 : i32
    %c0_i32_0 = arith.constant 0 : i32
    %c0_i32_1 = arith.constant 0 : i32
    return %c0_i32, %c0_i32_0 : i32, i32
  }
  func.func @transform_4(%arg0: i32) -> (i32, i32) {
    %c0_i32 = arith.constant 0 : i32
    %c0_i32_0 = arith.constant 0 : i32
    %c0_i32_1 = arith.constant 0 : i32
    return %c0_i32, %c0_i32_0 : i32, i32
  }
  func.func @transform_5(%arg0: i32) -> (i32, i32) {
    %c0_i32 = arith.constant 0 : i32
    %c0_i32_0 = arith.constant 0 : i32
    %c0_i32_1 = arith.constant 0 : i32
    return %c0_i32, %c0_i32_0 : i32, i32
  }
  func.func @transform_6(%arg0: i32) -> (i32, i32) {
    %c0_i32 = arith.constant 0 : i32
    %c0_i32_0 = arith.constant 0 : i32
    %c0_i32_1 = arith.constant 0 : i32
    return %c0_i32, %c0_i32_0 : i32, i32
  }
  func.func @transform_7(%arg0: i32) -> (i32, i32) {
    %c0_i32 = arith.constant 0 : i32
    %c0_i32_0 = arith.constant 0 : i32
    return %arg0, %c0_i32 : i32, i32
  }
}

module attributes {stable_mosaic.version = 11 : i64} {
  func.func @kernel(%arg0: i32, %arg1: memref<8x32xf32, #tpu.memory_space<vmem>>, %arg2: memref<32x32xf32, #tpu.memory_space<vmem>>, %arg3: memref<1x32xf32, #tpu.memory_space<vmem>>, %arg4: memref<32x16xf32, #tpu.memory_space<vmem>>, %arg5: memref<1x16xf32, #tpu.memory_space<vmem>>, %arg6: memref<16x128xf32, #tpu.memory_space<vmem>>, %arg7: memref<1x128xf32, #tpu.memory_space<vmem>>, %arg8: memref<8x128xf32, #tpu.memory_space<vmem>>) attributes {dimension_semantics = [#tpu.dimension_semantics<parallel>], iteration_bounds = array<i64: 1>, scalar_prefetch = 0 : i64, scratch_operands = 0 : i64, tpu.core_type = #tpu.core_type<tc>, window_params = [{transform_indices = @transform_0, window_bounds = array<i64: 8, 32>}, {pipeline_mode = #tpu.pipeline_mode<synchronous>, transform_indices = @transform_1, window_bounds = array<i64: 32, 32>}, {pipeline_mode = #tpu.pipeline_mode<synchronous>, transform_indices = @transform_2, window_bounds = array<i64: 1, 32>}, {pipeline_mode = #tpu.pipeline_mode<synchronous>, transform_indices = @transform_3, window_bounds = array<i64: 32, 16>}, {pipeline_mode = #tpu.pipeline_mode<synchronous>, transform_indices = @transform_4, window_bounds = array<i64: 1, 16>}, {pipeline_mode = #tpu.pipeline_mode<synchronous>, transform_indices = @transform_5, window_bounds = array<i64: 16, 128>}, {pipeline_mode = #tpu.pipeline_mode<synchronous>, transform_indices = @transform_6, window_bounds = array<i64: 1, 128>}, {transform_indices = @transform_7, window_bounds = array<i64: 8, 128>}]} {
    %c0 = arith.constant 0 : index
    %c0_0 = arith.constant 0 : index
    %0 = vector.load %arg1[%c0, %c0_0] : memref<8x32xf32, #tpu.memory_space<vmem>>, vector<8x32xf32>
    %c0_1 = arith.constant 0 : index
    %c0_2 = arith.constant 0 : index
    %1 = vector.load %arg2[%c0_1, %c0_2] : memref<32x32xf32, #tpu.memory_space<vmem>>, vector<32x32xf32>
    %cst = arith.constant dense<0.000000e+00> : vector<8x32xf32>
    %2 = tpu.matmul %0, %1, %cst {dimension_numbers = #tpu.dot_dimension_numbers<[1], [0], [0], [1], [0, 0, 1, 1], [], []>} : vector<8x32xf32>, vector<32x32xf32>, vector<8x32xf32> -> vector<8x32xf32>
    %c0_3 = arith.constant 0 : index
    %c0_4 = arith.constant 0 : index
    %3 = vector.load %arg3[%c0_3, %c0_4] : memref<1x32xf32, #tpu.memory_space<vmem>>, vector<1x32xf32>
    %4 = vector.broadcast %3 : vector<1x32xf32> to vector<8x32xf32>
    %5 = arith.addf %2, %4 : vector<8x32xf32>
    %cst_5 = arith.constant 0.000000e+00 : f32
    %6 = vector.broadcast %cst_5 : f32 to vector<8x32xf32>
    %7 = arith.maximumf %5, %6 : vector<8x32xf32>
    %c0_6 = arith.constant 0 : index
    %c0_7 = arith.constant 0 : index
    %8 = vector.load %arg4[%c0_6, %c0_7] : memref<32x16xf32, #tpu.memory_space<vmem>>, vector<32x16xf32>
    %cst_8 = arith.constant dense<0.000000e+00> : vector<8x16xf32>
    %9 = tpu.matmul %7, %8, %cst_8 {dimension_numbers = #tpu.dot_dimension_numbers<[1], [0], [0], [1], [0, 0, 1, 1], [], []>} : vector<8x32xf32>, vector<32x16xf32>, vector<8x16xf32> -> vector<8x16xf32>
    %c0_9 = arith.constant 0 : index
    %c0_10 = arith.constant 0 : index
    %10 = vector.load %arg5[%c0_9, %c0_10] : memref<1x16xf32, #tpu.memory_space<vmem>>, vector<1x16xf32>
    %11 = vector.broadcast %10 : vector<1x16xf32> to vector<8x16xf32>
    %12 = arith.addf %9, %11 : vector<8x16xf32>
    %c0_11 = arith.constant 0 : index
    %c0_12 = arith.constant 0 : index
    %13 = vector.load %arg6[%c0_11, %c0_12] : memref<16x128xf32, #tpu.memory_space<vmem>>, vector<16x128xf32>
    %cst_13 = arith.constant dense<0.000000e+00> : vector<8x128xf32>
    %14 = tpu.matmul %12, %13, %cst_13 {dimension_numbers = #tpu.dot_dimension_numbers<[1], [0], [0], [1], [0, 0, 1, 1], [], []>} : vector<8x16xf32>, vector<16x128xf32>, vector<8x128xf32> -> vector<8x128xf32>
    %15 = arith.mulf %12, %12 : vector<8x16xf32>
    %cst_14 = arith.constant dense<0.000000e+00> : vector<8xf32>
    %16 = vector.multi_reduction <add>, %15, %cst_14 [1] : vector<8x16xf32> to vector<8xf32>
    %17 = vector.shape_cast %16 : vector<8xf32> to vector<8x1xf32>
    %c0_15 = arith.constant 0 : index
    %c0_16 = arith.constant 0 : index
    %18 = vector.load %arg7[%c0_15, %c0_16] : memref<1x128xf32, #tpu.memory_space<vmem>>, vector<1x128xf32>
    %19 = vector.broadcast %17 : vector<8x1xf32> to vector<8x128xf32>
    %20 = vector.broadcast %18 : vector<1x128xf32> to vector<8x128xf32>
    %21 = arith.addf %19, %20 : vector<8x128xf32>
    %22 = arith.addf %21, %14 : vector<8x128xf32>
    %cst_17 = arith.constant 0.000000e+00 : f32
    %23 = vector.broadcast %cst_17 : f32 to vector<8x128xf32>
    %24 = arith.maximumf %22, %23 : vector<8x128xf32>
    %cst_18 = arith.constant 1.000000e+00 : f32
    %25 = vector.broadcast %cst_18 : f32 to vector<8x128xf32>
    %26 = arith.addf %25, %24 : vector<8x128xf32>
    %27 = tpu.reciprocal %26 {approx = true} : vector<8x128xf32> -> vector<8x128xf32>
    %cst_19 = arith.constant dense<0.000000e+00> : vector<8xf32>
    %28 = vector.multi_reduction <add>, %27, %cst_19 [1] : vector<8x128xf32> to vector<8xf32>
    %29 = vector.shape_cast %28 : vector<8xf32> to vector<8x1xf32>
    %30 = tpu.reciprocal %29 : vector<8x1xf32> -> vector<8x1xf32>
    %31 = vector.broadcast %30 : vector<8x1xf32> to vector<8x128xf32>
    %32 = arith.mulf %27, %31 : vector<8x128xf32>
    %c0_20 = arith.constant 0 : index
    %c0_21 = arith.constant 0 : index
    %33 = vector.load %arg8[%c0_20, %c0_21] : memref<8x128xf32, #tpu.memory_space<vmem>>, vector<8x128xf32>
    tpu.vector_store %arg8[%c0_20, %c0_21], %32 {strides = array<i32>} : memref<8x128xf32, #tpu.memory_space<vmem>>, vector<8x128xf32>,
    return
  }
  func.func @transform_0(%arg0: i32) -> (i32, i32) {
    %c0_i32 = arith.constant 0 : i32
    %c0_i32_0 = arith.constant 0 : i32
    return %arg0, %c0_i32 : i32, i32
  }
  func.func @transform_1(%arg0: i32) -> (i32, i32) {
    %c0_i32 = arith.constant 0 : i32
    %c0_i32_0 = arith.constant 0 : i32
    %c0_i32_1 = arith.constant 0 : i32
    return %c0_i32, %c0_i32_0 : i32, i32
  }
  func.func @transform_2(%arg0: i32) -> (i32, i32) {
    %c0_i32 = arith.constant 0 : i32
    %c0_i32_0 = arith.constant 0 : i32
    %c0_i32_1 = arith.constant 0 : i32
    return %c0_i32, %c0_i32_0 : i32, i32
  }
  func.func @transform_3(%arg0: i32) -> (i32, i32) {
    %c0_i32 = arith.constant 0 : i32
    %c0_i32_0 = arith.constant 0 : i32
    %c0_i32_1 = arith.constant 0 : i32
    return %c0_i32, %c0_i32_0 : i32, i32
  }
  func.func @transform_4(%arg0: i32) -> (i32, i32) {
    %c0_i32 = arith.constant 0 : i32
    %c0_i32_0 = arith.constant 0 : i32
    %c0_i32_1 = arith.constant 0 : i32
    return %c0_i32, %c0_i32_0 : i32, i32
  }
  func.func @transform_5(%arg0: i32) -> (i32, i32) {
    %c0_i32 = arith.constant 0 : i32
    %c0_i32_0 = arith.constant 0 : i32
    %c0_i32_1 = arith.constant 0 : i32
    return %c0_i32, %c0_i32_0 : i32, i32
  }
  func.func @transform_6(%arg0: i32) -> (i32, i32) {
    %c0_i32 = arith.constant 0 : i32
    %c0_i32_0 = arith.constant 0 : i32
    %c0_i32_1 = arith.constant 0 : i32
    return %c0_i32, %c0_i32_0 : i32, i32
  }
  func.func @transform_7(%arg0: i32) -> (i32, i32) {
    %c0_i32 = arith.constant 0 : i32
    %c0_i32_0 = arith.constant 0 : i32
    return %arg0, %c0_i32 : i32, i32
  }
}

</mosaic_0001>

<bundles_post_ra>
// kernel: tpu_custom_call.1
= control target key start
LH: loop header
LB: loop body
LE: loop exit
PB: predicated region body
PF: predicated region fallthrough
CT: control target
= control target key end

     0   :  { %12 = vsyncpa [#allocation3], 0  ;;  %s516_s0 = inlined_call_operand.hbm [shape: f32[8,32], index: 0, kind: input, shape index: {}]   ;;  %s517_s1 = inlined_call_operand.vmem [shape: f32[32,32], index: 1, kind: input, shape index: {}]   ;;  %s518_s2 = inlined_call_operand.vmem [shape: f32[1,32], index: 2, kind: input, shape index: {}]   ;;  %s519_s3 = inlined_call_operand.vmem [shape: f32[32,16], index: 3, kind: input, shape index: {}]   ;;  %s520_s4 = inlined_call_operand.vmem [shape: f32[1,16], index: 4, kind: input, shape index: {}]   ;;  %s521_s5 = inlined_call_operand.vmem [shape: f32[16,128], index: 5, kind: input, shape index: {}]   ;;  %s522_s6 = inlined_call_operand.vmem [shape: f32[1,128], index: 6, kind: input, shape index: {}]   ;;  %s523_s7 = inlined_call_operand.hbm [shape: f32[8,128], index: 7, kind: output, shape index: {}]  }
   0x1   :  { %13 = vsyncpa [#allocation4], 0  ;;  %s422_s24 = smov [#allocation2]  }
   0x2   :  { %s20_s25 = sshll.u32 %s422_s24, 4  ;;  %s21_s25 = int_to_ptr.vmem [resolvable:$true] %s20_s25 }
   0x3   :  { %s386_s26 = scalar_lea.vmem %s21_s25, 128  ;;  %p391_p1 = scmp.lt.s32.totalorder %s21_s25, %s21_s25 }
   0x4   :  { %p387_p0 = scmp.ne.s32.totalorder %s21_s25, %s386_s26  ;;  %p392_p2 = scmp.lt.s32.totalorder %s386_s26, %s386_s26 }
   0x6   :  { %p393_p3 = por %p392_p2, %p391_p1 }
   0x8   :  { %p394_p4 = pnand %p393_p3, %p387_p0 }
   0xa   :  { %397 = shalt.err (!%p394_p4)
}
   0xb   :  { %23 = dma.hbm_to_vmem [thread:$0]  %s516_s0, 128, %s21_s25, [#allocation3]  }
   0xc   :  { %418 = dma.done.wait [#allocation3], 128  }
   0xd   :  { %419 = vsyncadd [#allocation3], 4294967168  ;;  %v423_v0 = vmov 0.0   ;;  %vm424_vm0 = vmmov 0   ;;  %v43_v1 = vld [vmem:[%s517_s1 + $0x18] sm:$0xff]  ;;  %v42_v2 = vld [vmem:[%s517_s1 + $0x10] sm:$0xff] }
   0xe   :  { %341 = vmatprep.subr.mxu0 %v423_v0  ;;  %349 = vmatprep.mubr.msk.f32.mxu0 %vm424_vm0, %v423_v0  ;;  %v129_v3 = vld [vmem:[%s519_s3 + $0x18] sm:$0xff]  ;;  %v41_v4 = vld [vmem:[%s517_s1 + $0x8] sm:$0xff]  ;;  %v40_v5 = vld [vmem:[%s517_s1] sm:$0xff]  ;;  %vm51_vm1 = vcmask 261120   ;;  %vm212_vm2 = vcmask 130048  }
   0xf   :  { %352 = vmatprep.subr.mxu1 %v423_v0  ;;  %360 = vmatprep.mubr.msk.f32.mxu1 %vm424_vm0, %v423_v0  ;;  %v39_v6 = vld [vmem:[#allocation2] sm:$0xff]  ;;  %v128_v7 = vld [vmem:[%s519_s3 + $0x10] sm:$0xff]  ;;  %v127_v8 = vld [vmem:[%s519_s3 + $0x8] sm:$0xff] }
  0x10   :  { %342 = vmatpush3.msra.mxu0 %v43_v1  ;;  %353 = vmatpush3.msra.mxu1 %v129_v3  ;;  %v126_v9 = vld [vmem:[%s519_s3] sm:$0xff]  ;;  %v211_v10 = vld [vmem:[%s521_s5 + $0x8] sm:$0xff] }
  0x11   :  { %343 = vmatprep.subr.mxu0 %v423_v0  ;;  %354 = vmatprep.subr.mxu1 %v423_v0  ;;  %v322_v11 = vld [vmem:[%s518_s2] ss:$0 sm:$0xff] }
  0x12   :  { %344 = vmatpush3.msra.mxu0 %v42_v2  ;;  %355 = vmatpush3.msra.mxu1 %v128_v7  ;;  %v210_v16 = vld [vmem:[%s521_s5] sm:$0xff] }
  0x13   :  { %345 = vmatprep.subr.mxu0 %v423_v0  ;;  %356 = vmatprep.subr.mxu1 %v423_v0  ;;  %v324_v17 = vld [vmem:[%s520_s4] ss:$0 sm:$0xff]  ;;  %s425_s4 = smov [#allocation5]  }
  0x14   :  { %346 = vmatpush3.msra.mxu0 %v41_v4  ;;  %357 = vmatpush3.msra.mxu1 %v127_v8  ;;  %v327_v23 = vld [vmem:[%s522_s6] ss:$0 sm:$0xff]  ;;  %s313_s5 = sshll.u32 %s425_s4, 4  ;;  %s314_s5 = int_to_ptr.vmem [resolvable:$true] %s313_s5 }
  0x15   :  { %347 = vmatprep.subr.mxu0 %v423_v0  ;;  %358 = vmatprep.subr.mxu1 %v423_v0  ;;  %s398_s28 = scalar_lea.vmem %s314_s5, 128  ;;  %p403_p6 = scmp.lt.s32.totalorder %s314_s5, %s314_s5 }
  0x16   :  { %348 = vmatpush3.msra.mxu0 %v40_v5  ;;  %359 = vmatpush3.msra.mxu1 %v126_v9  ;;  %p399_p5 = scmp.ne.s32.totalorder %s314_s5, %s398_s28  ;;  %p404_p7 = scmp.lt.s32.totalorder %s398_s28, %s398_s28 }
  0x17   :  { %350 = vmatmul.mubr.msk.f32.vlgmr.msra.gmra.mxu0 %vm51_vm1, %v39_v6  ;;  %363 = vmatprep.subr.mxu0 %v423_v0 }
  0x18   :  { %367 = vmatprep.mubr.msk.f32.mxu0 %vm424_vm0, %v423_v0  ;;  %364 = vmatpush3.msra.mxu0 %v211_v10  ;;  %p405_p8 = por %p404_p7, %p403_p6 }
  0x19   :  { %365 = vmatprep.subr.mxu0 %v423_v0 }
  0x1a   :  { %366 = vmatpush3.msra.mxu0 %v210_v16  ;;  %p406_p9 = pnand %p405_p8, %p399_p5 }
  0xd7   :  { %v121_v12 = vpop.f32.mrf.mxu0 }
  0xd8   :  { %v122_v13 = vadd.f32 %v322_v11, %v121_v12 }
  0xd9   :  { %v351_v14 = vpop.f32.mrf.mxu0 }
  0xda   :  { %v125_v15 = vmax.f32 %v122_v13, 0.0 }
  0xdc   :  { %361 = vmatmul.mubr.msk.f32.vlgmr.msra.gmra.mxu1 %vm51_vm1, %v125_v15 }
 0x19c   :  { %v206_v18 = vpop.f32.mrf.mxu1 }
 0x19d   :  { %v207_v19 = vadd.f32 %v324_v17, %v206_v18 }
 0x19e   :  { %v362_v20 = vpop.f32.mrf.mxu1 }
 0x19f   :  { %368 = vmatmul.mubr.msk.f32.vlgmr.msra.gmra.mxu0 %vm212_vm2, %v207_v19  ;;  %v286_v21 = vmul.f32 %v207_v19, %v207_v19 }
 0x1a1   :  { %v287_v22 = vsel %vm212_vm2, %v286_v21, 0.0 }
 0x1a2   :  { %288 = vadd.xlane.f32.xlu0 %v287_v22 }
 0x22b   :  { %v289_v24 = vpop.xlane.xlu0 %288 }
 0x22c   :  { %v297_v25 = vadd.f32 %v327_v23, %v289_v24 }
 0x25f   :  { %v282_v26 = vpop.f32.mrf.mxu0 }
 0x260   :  { %v298_v27 = vadd.f32 %v297_v25, %v282_v26 }
 0x261   :  { %v369_v28 = vpop.f32.mrf.mxu0 }
 0x262   :  { %v299_v29 = vmax.f32 %v298_v27, 0.0 }
 0x264   :  { %v300_v30 = vadd.f32 1.0, %v299_v29 }
 0x266   :  { %374 = vrcp.f32 %v300_v30 }
 0x273   :  { %v375_v31 = vpop.eup %374 }
 0x274   :  { %302 = vadd.xlane.f32.xlu0 %v375_v31 }
 0x2fd   :  { %v303_v32 = vpop.xlane.xlu0 %302 }
 0x2fe   :  { %376 = vrcp.f32 %v303_v32 }
 0x30b   :  { %v377_v33 = vpop.eup %376 }
 0x30c   :  { %v305_v34 = vmul.f32 %v377_v33, %v375_v31 }
 0x30e   :  { %306 = vst [vmem:[#allocation5] sm:$0xff] %v305_v34 }
 0x30f   :  { %409 = shalt.err (!%p406_p9)
}
 0x310   :  { %316 = dma.vmem_to_hbm [thread:$0]  %s314_s5, 128, %s523_s7, [#allocation4]  }
 0x311   :  { %420 = dma.done.wait [#allocation4], 128  }
 0x312   :  { %421 = vsyncadd [#allocation4], 4294967168 }
 0x313   :  { %320 = vsyncpa [#allocation3], 1 }
 0x314   :  { %321 = vsyncpa [#allocation4], 1 }

// kernel: tpu_custom_call.1
= control target key start
LH: loop header
LB: loop body
LE: loop exit
PB: predicated region body
PF: predicated region fallthrough
CT: control target
= control target key end

     0   :  { %12 = vsyncpa [#allocation3], 0  ;;  %s516_s0 = inlined_call_operand.hbm [shape: f32[8,32], index: 0, kind: input, shape index: {}]   ;;  %s517_s1 = inlined_call_operand.vmem [shape: f32[32,32], index: 1, kind: input, shape index: {}]   ;;  %s518_s2 = inlined_call_operand.vmem [shape: f32[1,32], index: 2, kind: input, shape index: {}]   ;;  %s519_s3 = inlined_call_operand.vmem [shape: f32[32,16], index: 3, kind: input, shape index: {}]   ;;  %s520_s4 = inlined_call_operand.vmem [shape: f32[1,16], index: 4, kind: input, shape index: {}]   ;;  %s521_s5 = inlined_call_operand.vmem [shape: f32[16,128], index: 5, kind: input, shape index: {}]   ;;  %s522_s6 = inlined_call_operand.vmem [shape: f32[1,128], index: 6, kind: input, shape index: {}]   ;;  %s523_s7 = inlined_call_operand.hbm [shape: f32[8,128], index: 7, kind: output, shape index: {}]  }
   0x1   :  { %13 = vsyncpa [#allocation4], 0  ;;  %s422_s24 = smov [#allocation2]  }
   0x2   :  { %s20_s25 = sshll.u32 %s422_s24, 4  ;;  %s21_s25 = int_to_ptr.vmem [resolvable:$true] %s20_s25 }
   0x3   :  { %s386_s26 = scalar_lea.vmem %s21_s25, 128  ;;  %p391_p1 = scmp.lt.s32.totalorder %s21_s25, %s21_s25 }
   0x4   :  { %p387_p0 = scmp.ne.s32.totalorder %s21_s25, %s386_s26  ;;  %p392_p2 = scmp.lt.s32.totalorder %s386_s26, %s386_s26 }
   0x6   :  { %p393_p3 = por %p392_p2, %p391_p1 }
   0x8   :  { %p394_p4 = pnand %p393_p3, %p387_p0 }
   0xa   :  { %397 = shalt.err (!%p394_p4)
}
   0xb   :  { %23 = dma.hbm_to_vmem [thread:$0]  %s516_s0, 128, %s21_s25, [#allocation3]  }
   0xc   :  { %418 = dma.done.wait [#allocation3], 128  }
   0xd   :  { %419 = vsyncadd [#allocation3], 4294967168  ;;  %v423_v0 = vmov 0.0   ;;  %vm424_vm0 = vmmov 0   ;;  %v43_v1 = vld [vmem:[%s517_s1 + $0x18] sm:$0xff]  ;;  %v42_v2 = vld [vmem:[%s517_s1 + $0x10] sm:$0xff] }
   0xe   :  { %341 = vmatprep.subr.mxu0 %v423_v0  ;;  %349 = vmatprep.mubr.msk.f32.mxu0 %vm424_vm0, %v423_v0  ;;  %v129_v3 = vld [vmem:[%s519_s3 + $0x18] sm:$0xff]  ;;  %v41_v4 = vld [vmem:[%s517_s1 + $0x8] sm:$0xff]  ;;  %v40_v5 = vld [vmem:[%s517_s1] sm:$0xff]  ;;  %vm51_vm1 = vcmask 261120   ;;  %vm212_vm2 = vcmask 130048  }
   0xf   :  { %352 = vmatprep.subr.mxu1 %v423_v0  ;;  %360 = vmatprep.mubr.msk.f32.mxu1 %vm424_vm0, %v423_v0  ;;  %v39_v6 = vld [vmem:[#allocation2] sm:$0xff]  ;;  %v128_v7 = vld [vmem:[%s519_s3 + $0x10] sm:$0xff]  ;;  %v127_v8 = vld [vmem:[%s519_s3 + $0x8] sm:$0xff] }
  0x10   :  { %342 = vmatpush3.msra.mxu0 %v43_v1  ;;  %353 = vmatpush3.msra.mxu1 %v129_v3  ;;  %v126_v9 = vld [vmem:[%s519_s3] sm:$0xff]  ;;  %v211_v10 = vld [vmem:[%s521_s5 + $0x8] sm:$0xff] }
  0x11   :  { %343 = vmatprep.subr.mxu0 %v423_v0  ;;  %354 = vmatprep.subr.mxu1 %v423_v0  ;;  %v322_v11 = vld [vmem:[%s518_s2] ss:$0 sm:$0xff] }
  0x12   :  { %344 = vmatpush3.msra.mxu0 %v42_v2  ;;  %355 = vmatpush3.msra.mxu1 %v128_v7  ;;  %v210_v16 = vld [vmem:[%s521_s5] sm:$0xff] }
  0x13   :  { %345 = vmatprep.subr.mxu0 %v423_v0  ;;  %356 = vmatprep.subr.mxu1 %v423_v0  ;;  %v324_v17 = vld [vmem:[%s520_s4] ss:$0 sm:$0xff]  ;;  %s425_s4 = smov [#allocation5]  }
  0x14   :  { %346 = vmatpush3.msra.mxu0 %v41_v4  ;;  %357 = vmatpush3.msra.mxu1 %v127_v8  ;;  %v327_v23 = vld [vmem:[%s522_s6] ss:$0 sm:$0xff]  ;;  %s313_s5 = sshll.u32 %s425_s4, 4  ;;  %s314_s5 = int_to_ptr.vmem [resolvable:$true] %s313_s5 }
  0x15   :  { %347 = vmatprep.subr.mxu0 %v423_v0  ;;  %358 = vmatprep.subr.mxu1 %v423_v0  ;;  %s398_s28 = scalar_lea.vmem %s314_s5, 128  ;;  %p403_p6 = scmp.lt.s32.totalorder %s314_s5, %s314_s5 }
  0x16   :  { %348 = vmatpush3.msra.mxu0 %v40_v5  ;;  %359 = vmatpush3.msra.mxu1 %v126_v9  ;;  %p399_p5 = scmp.ne.s32.totalorder %s314_s5, %s398_s28  ;;  %p404_p7 = scmp.lt.s32.totalorder %s398_s28, %s398_s28 }
  0x17   :  { %350 = vmatmul.mubr.msk.f32.vlgmr.msra.gmra.mxu0 %vm51_vm1, %v39_v6  ;;  %363 = vmatprep.subr.mxu0 %v423_v0 }
  0x18   :  { %367 = vmatprep.mubr.msk.f32.mxu0 %vm424_vm0, %v423_v0  ;;  %364 = vmatpush3.msra.mxu0 %v211_v10  ;;  %p405_p8 = por %p404_p7, %p403_p6 }
  0x19   :  { %365 = vmatprep.subr.mxu0 %v423_v0 }
  0x1a   :  { %366 = vmatpush3.msra.mxu0 %v210_v16  ;;  %p406_p9 = pnand %p405_p8, %p399_p5 }
  0xd7   :  { %v121_v12 = vpop.f32.mrf.mxu0 }
  0xd8   :  { %v122_v13 = vadd.f32 %v322_v11, %v121_v12 }
  0xd9   :  { %v351_v14 = vpop.f32.mrf.mxu0 }
  0xda   :  { %v125_v15 = vmax.f32 %v122_v13, 0.0 }
  0xdc   :  { %361 = vmatmul.mubr.msk.f32.vlgmr.msra.gmra.mxu1 %vm51_vm1, %v125_v15 }
 0x19c   :  { %v206_v18 = vpop.f32.mrf.mxu1 }
 0x19d   :  { %v207_v19 = vadd.f32 %v324_v17, %v206_v18 }
 0x19e   :  { %v362_v20 = vpop.f32.mrf.mxu1 }
 0x19f   :  { %368 = vmatmul.mubr.msk.f32.vlgmr.msra.gmra.mxu0 %vm212_vm2, %v207_v19  ;;  %v286_v21 = vmul.f32 %v207_v19, %v207_v19 }
 0x1a1   :  { %v287_v22 = vsel %vm212_vm2, %v286_v21, 0.0 }
 0x1a2   :  { %288 = vadd.xlane.f32.xlu0 %v287_v22 }
 0x22b   :  { %v289_v24 = vpop.xlane.xlu0 %288 }
 0x22c   :  { %v297_v25 = vadd.f32 %v327_v23, %v289_v24 }
 0x25f   :  { %v282_v26 = vpop.f32.mrf.mxu0 }
 0x260   :  { %v298_v27 = vadd.f32 %v297_v25, %v282_v26 }
 0x261   :  { %v369_v28 = vpop.f32.mrf.mxu0 }
 0x262   :  { %v299_v29 = vmax.f32 %v298_v27, 0.0 }
 0x264   :  { %v300_v30 = vadd.f32 1.0, %v299_v29 }
 0x266   :  { %374 = vrcp.f32 %v300_v30 }
 0x273   :  { %v375_v31 = vpop.eup %374 }
 0x274   :  { %302 = vadd.xlane.f32.xlu0 %v375_v31 }
 0x2fd   :  { %v303_v32 = vpop.xlane.xlu0 %302 }
 0x2fe   :  { %376 = vrcp.f32 %v303_v32 }
 0x30b   :  { %v377_v33 = vpop.eup %376 }
 0x30c   :  { %v305_v34 = vmul.f32 %v377_v33, %v375_v31 }
 0x30e   :  { %306 = vst [vmem:[#allocation5] sm:$0xff] %v305_v34 }
 0x30f   :  { %409 = shalt.err (!%p406_p9)
}
 0x310   :  { %316 = dma.vmem_to_hbm [thread:$0]  %s314_s5, 128, %s523_s7, [#allocation4]  }
 0x311   :  { %420 = dma.done.wait [#allocation4], 128  }
 0x312   :  { %421 = vsyncadd [#allocation4], 4294967168 }
 0x313   :  { %320 = vsyncpa [#allocation3], 1 }
 0x314   :  { %321 = vsyncpa [#allocation4], 1 }

</bundles_post_ra>
